<compile_context>
chip_gen: v7x
topology: tpu7x:2x2x1
jax: 0.10.0
libtpu: 0.0.40
codegen_flags: <defaults>
</compile_context>

<pallas_src>
import jax
import jax.numpy as jnp
from jax.experimental import pallas as pl
from jax.experimental.pallas import tpu as pltpu

_MiB = 1024 * 1024


def _noise_injection_kernel(img_ref, noise_ref, w_ref, o_ref):
    # img_ref:   (1, TC, T_HW)
    # noise_ref: (1, 1|TC, T_HW)   (1 broadcasts over channels)
    # w_ref:     (1, TC, 1)        resident / tiny
    # o_ref:     (1, TC, T_HW)
    w = w_ref[...]  # hoist the weight load / broadcast once per grid step
    o_ref[...] = (img_ref[...] + w * noise_ref[...]).astype(o_ref.dtype)


def _pad8(n):
    return max(8, ((n + 7) // 8) * 8)


def _vmem_capacity_bytes():
    """Best-effort physical VMEM per TensorCore (generation-aware)."""
    try:
        cap = int(getattr(pltpu.get_tpu_info(), "vmem_capacity_bytes", 0))
        if cap > 0:
            return cap
    except Exception:
        pass
    return 64 * _MiB  # conservative fallback (v7x per-core VMEM)


def _choose_tiles(B, C, NC, HW, isz_img, isz_noise, isz_out, isz_w):
    """Pick (tile_c, tile_hw, vmem_limit_bytes)."""
    cap = _vmem_capacity_bytes()
    # Double-buffered working-set target: ~1/3 of VMEM, capped at 32 MiB.
    #   v7x (64 MiB/TC)  -> ~20 MiB working set
    #   v5e/v6e (128 MiB) -> ~31 MiB working set
    budget = max(min(cap // 3, 32 * _MiB) - _MiB, 4 * _MiB)

    def working_set(tc, t_hw):
        # double-buffered img + out + noise blocks (sublane padding counted)
        nc = tc if NC != 1 else 1
        per = (_pad8(tc) * (isz_img + isz_out) + _pad8(nc) * isz_noise) * t_hw
        return 2 * per

    min_hw = HW if HW <= 128 else 128

    # Channel tiling fallback for very wide C (keeps double-buffering alive
    # on every generation instead of silently exceeding the budget).
    tc = C
    if C > 8 and working_set(C, min_hw) > budget:
        denom = 2 * min_hw * (isz_img + isz_out + (isz_noise if NC != 1 else 0))
        tc = max(8, min(C, (budget // denom // 8) * 8))
        while tc > 8 and working_set(tc, min_hw) > budget:
            tc -= 8

    # Spatial tile: biggest lane-dense block that fits the byte budget.
    # No lane cap — the byte budget alone bounds VMEM.
    nc = tc if NC != 1 else 1
    per_lane = 2 * (_pad8(tc) * (isz_img + isz_out) + _pad8(nc) * isz_noise)
    max_t = max(128, (budget // per_lane // 128) * 128)
    t_hw = HW if HW <= max_t else max_t

    # Keep enough grid steps for megacore sharding + pipeline depth (v7x).
    n_c = pl.cdiv(C, tc)
    if HW > 128:
        min_steps = 8
        steps = B * n_c * pl.cdiv(HW, t_hw)
        if steps < min_steps:
            want_tiles = -(-min_steps // (B * n_c))
            t_small = max(128, (HW // want_tiles) // 128 * 128)
            t_hw = min(t_hw, t_small)

    actual_ws = working_set(tc, t_hw) + 2 * _pad8(tc) * 128 * isz_w
    vmem_limit = min(cap * 3 // 4, actual_ws + 16 * _MiB)
    vmem_limit = max(vmem_limit, actual_ws + 2 * _MiB)
    vmem_limit = min(vmem_limit, cap - 4 * _MiB)
    return tc, t_hw, int(vmem_limit)


def noise_injection(image, noise, weights, *, tile_hw=None, tile_c=None,
                    alias_image_to_output=False, out_dtype=None):
    """image: (B, C, H, W), noise: (B, 1|C, H, W), weights: (1, C, 1, 1)."""
    B, C, H, W = image.shape
    assert weights.shape == (1, C, 1, 1)
    assert noise.shape[0] == B and noise.shape[2:] == (H, W)
    NC = noise.shape[1]
    assert NC in (1, C)
    HW = H * W

    if out_dtype is None:
        # Match PyTorch type promotion (e.g. bf16 image + f32 weights -> f32).
        # Pass out_dtype=image.dtype explicitly to avoid promotion and halve
        # output write traffic for bf16 inputs (opt-in, not PyTorch-exact).
        out_dtype = jnp.result_type(image.dtype, weights.dtype, noise.dtype)

    img3 = image.reshape(B, C, HW)
    noise3 = noise.reshape(B, NC, HW)
    w3 = weights.reshape(1, C, 1)

    isz_img = jnp.dtype(image.dtype).itemsize
    isz_noise = jnp.dtype(noise.dtype).itemsize
    isz_out = jnp.dtype(out_dtype).itemsize
    isz_w = jnp.dtype(weights.dtype).itemsize

    tc, t_hw, vmem_limit = _choose_tiles(
        B, C, NC, HW, isz_img, isz_noise, isz_out, isz_w)
    if tile_c is not None:
        tc = tile_c
    if tile_hw is not None:
        t_hw = tile_hw

    n_c = pl.cdiv(C, tc)
    n_hw = pl.cdiv(HW, t_hw)

    if NC == 1:
        # (1, 1, t_hw): sublane dim equals the full array dim -> legal block.
        noise_spec = pl.BlockSpec((1, 1, t_hw), lambda b, t, c: (b, 0, t))
    else:
        noise_spec = pl.BlockSpec((1, tc, t_hw), lambda b, t, c: (b, c, t))

    kwargs = {}
    if alias_image_to_output and out_dtype == image.dtype:
        # Reuse the image buffer for the output (only valid with matching
        # dtype; caller must not reuse `image` afterwards).
        kwargs["input_output_aliases"] = {0: 0}

    out = pl.pallas_call(
        _noise_injection_kernel,
        out_shape=jax.ShapeDtypeStruct((B, C, HW), out_dtype),
        grid_spec=pltpu.PrefetchScalarGridSpec(
            num_scalar_prefetch=0,
            # Channel axis last (fastest): the NC=1 noise block index is
            # constant across it, so the noise tile stays resident.
            grid=(B, n_hw, n_c),
            in_specs=[
                pl.BlockSpec((1, tc, t_hw), lambda b, t, c: (b, c, t)),
                noise_spec,
                pl.BlockSpec((1, tc, 1), lambda b, t, c: (0, c, 0)),
            ],
            out_specs=pl.BlockSpec((1, tc, t_hw), lambda b, t, c: (b, c, t)),
        ),
        compiler_params=pltpu.CompilerParams(
            # All axes independent -> shard across v7x's two TensorCores and
            # let the runtime pipeline DMA/compute across grid steps.
            dimension_semantics=("parallel", "parallel", "parallel"),
            vmem_limit_bytes=vmem_limit,
        ),
        **kwargs,
    )(img3, noise3, w3)

    return out.reshape(B, C, H, W)


if __name__ == "__main__":
    key = jax.random.PRNGKey(0)
    k_img, k_noise, k_w = jax.random.split(key, 3)

    B, C, H, W = 2, 4, 16, 16
    image = jax.random.normal(k_img, (B, C, H, W), dtype=jnp.float32)
    noise = jax.random.normal(k_noise, (B, 1, H, W), dtype=jnp.float32)
    # deterministic "randn" init of the parameter (shape (1, C, 1, 1))
    weights = jax.random.normal(k_w, (1, C, 1, 1), dtype=jnp.float32)

    out = noise_injection(image, noise, weights)
    out = jax.block_until_ready(out)

    # sanity check against plain-JAX reference
    ref = image + weights * noise
    assert out.shape == ref.shape and out.dtype == ref.dtype
    assert jnp.allclose(out, ref, atol=1e-6, rtol=1e-6)

    print("KERNEL_OK")
</pallas_src>

<mosaic_0001>
module attributes {stable_mosaic.version = 11 : i64} {
  func.func @_noise_injection_kernel(%arg0: i32, %arg1: i32, %arg2: i32, %arg3: memref<1x4x128xf32, #tpu.memory_space<vmem>>, %arg4: memref<1x1x128xf32, #tpu.memory_space<vmem>>, %arg5: memref<1x4x1xf32, #tpu.memory_space<vmem>>, %arg6: memref<1x4x128xf32, #tpu.memory_space<vmem>>) attributes {dimension_semantics = [#tpu.dimension_semantics<parallel>, #tpu.dimension_semantics<parallel>, #tpu.dimension_semantics<parallel>], iteration_bounds = array<i64: 2, 2, 1>, scalar_prefetch = 0 : i64, scratch_operands = 0 : i64, tpu.core_type = #tpu.core_type<tc>, window_params = [{transform_indices = @transform_0, window_bounds = array<i64: 1, 4, 128>}, {transform_indices = @transform_1, window_bounds = array<i64: 1, 1, 128>}, {transform_indices = @transform_2, window_bounds = array<i64: 1, 4, 1>}, {transform_indices = @transform_3, window_bounds = array<i64: 1, 4, 128>}]} {
    %c0 = arith.constant 0 : index
    %c0_0 = arith.constant 0 : index
    %c0_1 = arith.constant 0 : index
    %0 = vector.load %arg5[%c0, %c0_0, %c0_1] : memref<1x4x1xf32, #tpu.memory_space<vmem>>, vector<1x4x1xf32>
    %c0_2 = arith.constant 0 : index
    %c0_3 = arith.constant 0 : index
    %c0_4 = arith.constant 0 : index
    %1 = vector.load %arg3[%c0_2, %c0_3, %c0_4] : memref<1x4x128xf32, #tpu.memory_space<vmem>>, vector<1x4x128xf32>
    %c0_5 = arith.constant 0 : index
    %c0_6 = arith.constant 0 : index
    %c0_7 = arith.constant 0 : index
    %2 = vector.load %arg4[%c0_5, %c0_6, %c0_7] : memref<1x1x128xf32, #tpu.memory_space<vmem>>, vector<1x1x128xf32>
    %3 = vector.broadcast %0 : vector<1x4x1xf32> to vector<1x4x128xf32>
    %4 = vector.broadcast %2 : vector<1x1x128xf32> to vector<1x4x128xf32>
    %5 = arith.mulf %3, %4 : vector<1x4x128xf32>
    %6 = arith.addf %1, %5 : vector<1x4x128xf32>
    %c0_8 = arith.constant 0 : index
    %c0_9 = arith.constant 0 : index
    %c0_10 = arith.constant 0 : index
    %7 = vector.load %arg6[%c0_8, %c0_9, %c0_10] : memref<1x4x128xf32, #tpu.memory_space<vmem>>, vector<1x4x128xf32>
    tpu.vector_store %arg6[%c0_8, %c0_9, %c0_10], %6 {strides = array<i32>} : memref<1x4x128xf32, #tpu.memory_space<vmem>>, vector<1x4x128xf32>,
    return
  }
  func.func @transform_0(%arg0: i32, %arg1: i32, %arg2: i32) -> (i32, i32, i32) {
    %c0_i32 = arith.constant 0 : i32
    return %arg0, %arg2, %arg1 : i32, i32, i32
  }
  func.func @transform_1(%arg0: i32, %arg1: i32, %arg2: i32) -> (i32, i32, i32) {
    %c0_i32 = arith.constant 0 : i32
    %c0_i32_0 = arith.constant 0 : i32
    return %arg0, %c0_i32, %arg1 : i32, i32, i32
  }
  func.func @transform_2(%arg0: i32, %arg1: i32, %arg2: i32) -> (i32, i32, i32) {
    %c0_i32 = arith.constant 0 : i32
    %c0_i32_0 = arith.constant 0 : i32
    %c0_i32_1 = arith.constant 0 : i32
    return %c0_i32, %arg2, %c0_i32_0 : i32, i32, i32
  }
  func.func @transform_3(%arg0: i32, %arg1: i32, %arg2: i32) -> (i32, i32, i32) {
    %c0_i32 = arith.constant 0 : i32
    return %arg0, %arg2, %arg1 : i32, i32, i32
  }
}

</mosaic_0001>

<bundles_post_ra>
// kernel: tpu_custom_call.1
= control target key start
LH: loop header
LB: loop body
LE: loop exit
PB: predicated region body
PF: predicated region fallthrough
CT: control target
= control target key end

     0   :  { %s874_s0 = inlined_call_operand.hbm [shape: f32[2,4,256], index: 0, kind: input, shape index: {}]   ;;  %s875_s1 = inlined_call_operand.vmem [shape: f32[2,1,256], index: 1, kind: input, shape index: {}]   ;;  %s876_s2 = inlined_call_operand.vmem [shape: f32[1,4,1], index: 2, kind: input, shape index: {}]   ;;  %s877_s3 = inlined_call_operand.hbm [shape: f32[2,4,256], index: 3, kind: output, shape index: {}]  }
   0x1   :  { %880 = sst [smem:[#allocation9_spill]] %s874_s0 }
   0x2   :  { %881 = sst [smem:[#allocation10_spill]] %s876_s2 }
   0x3   :  { %8 = vsyncpa [#allocation3], 0 }
   0x4   :  { %10 = vsyncpa [#allocation3 + $0x1], 0 }
   0x5   :  { %11 = vsyncpa [#allocation4], 0 }
   0x6   :  { %13 = vsyncpa [#allocation4 + $0x1], 0  ;;  %s670_s12 = smov 0   ;;  %s672_s13 = smov 0  }
   0x7   :  { %s674_s14 = smov 0   ;;  %s676_s15 = smov 0  }
   0x8   :  { %s678_s16 = smov 0   ;;  %s680_s17 = smov 0  }
   0x9   :  { %s682_s18 = smov 0   ;;  %s684_s19 = smov 0  }
   0xa LB: > { %s419_s20 = sadd.s32 4294967295, %s645_s19   ;;  %s420_s21 = sadd.s32 4294967294, %s645_s19   ;;  %s645_s19 = sphi %s684_s19, %s19_s19   ;;  %s641_s18 = sphi %s682_s18, %s901_s18   ;;  %s637_s17 = sphi %s680_s17, %s900_s17   ;;  %s633_s16 = sphi %s678_s16, %s899_s16   ;;  %s629_s15 = sphi %s676_s15, %s898_s15   ;;  %s625_s14 = sphi %s674_s14, %s897_s14   ;;  %s621_s13 = sphi %s672_s13, %s896_s13   ;;  %s617_s12 = sphi %s670_s12, %s895_s12  }
   0xb   : > { %s34_s22 = sadd.s32 1, %s637_s17  ;;  %s38_s23 = sadd.s32 1, %s641_s18 }
   0xc   : > { %p36_p0 = scmp.ge.s32.totalorder %s34_s22, 2  ;;  %s49_s24 = sadd.s32 1, %s625_s14 }
   0xd   : > { %p56_p1 = scmp.ne.s32.totalorder %s625_s14, %s621_s13  ;;  %p57_p2 = scmp.eq.s32.totalorder %s645_s19, 0 }
   0xe   : > { %s903_s22 = smov (%p36_p0, %s34_s22), 0  ;;  %s905_s23 = smov (!%p36_p0, %s38_s23), %s641_s18 }
   0xf   : > { %s45_s25 = ssub.s32 %s637_s17, %s903_s22  ;;  %p723_p3 = por %p57_p2, %p56_p1 }
  0x10   : > { %p40_p4 = scmp.ge.s32.totalorder %s905_s23, 2  ;;  %p62_p5 = scmp.ne.s32.totalorder %s621_s13, %s617_s12 }
  0x11   : > { %p63_p6 = scmp.eq.s32.totalorder %s419_s20, 0  ;;  %p144_p7 = scmp.eq.s32.totalorder %s419_s20, 3 }
  0x12   : > { %s907_s23 = smov (%p40_p4, %s905_s23), 0  ;;  %p150_p10 = scmp.eq.s32.totalorder %s420_s21, 3 }
  0x13   : > { %883 = sst [smem:[#allocation8_spill]] %s907_s23  ;;  %p731_p8 = por %p63_p6, %p62_p5 }
  0x14   : > { %p735_p9 = por %p144_p7, %p56_p1  ;;  %s42_s29 = ssub.s32 %s641_s18, %s907_s23 }
  0x15   : > { %s46_s30 = sor.u32 %s45_s25, %s42_s29  ;;  %p741_p12 = por %p150_p10, %p62_p5 }
  0x16   : > { %s885_s28 = scalar_select %p735_p9, 1, 0 }
  0x17   : > { %p47_p11 = scmp.eq.s32.totalorder %s46_s30, 0  ;;  %p449_p13 = scmp.lt.s32.totalorder %s645_s19, 4 }
  0x18   : > { %s886_s4 = scalar_select %p741_p12, 1, 0 }
  0x19   : > { %s177_s5 = sand.u32 1, %s625_s14   ;;  %s425_s8 = sshll.u32 %s641_s18, 1 }
  0x1a   : > { %s748_s6 = scalar_select %p47_p11, %s625_s14, %s49_s24  }
  0x1b   : > { %s424_s7 = sshll.u32 %s177_s5, 2  ;;  %s188_s9 = sadd.s32 %s637_s17, %s425_s8 }
  0x1c   : > { %s181_s10 = scalar_lea.vmem [#allocation2], %s424_s7  ;;  %s426_s20 = sshll.u32 %s188_s9, 6 }
  0x1d   : > { %s192_s11 = sshll.u32 %s181_s10, 4  ;;  %s887_s0 = sld [smem:[#allocation9_spill]]  ;;  %s752_s11 = int_to_ptr.vmem [resolvable:$true] %s192_s11 }
  0x1e   : > { %p761_p0 = pnand %p449_p13, %p723_p3  ;;  %s178_s30 = scalar_lea.sflag [#allocation3], %s177_s5 }
  0x20   : > { %p519_p5 = pneg %p761_p0 }
  0x23   : > { %s757_s29 = scalar_lea.hbm %s887_s0, %s426_s20  ;;  %s522_s9 = scalar_lea.hbm %s887_s0, 256 }
  0x24   : > { %s517_s7 = scalar_lea.hbm %s757_s29, 64  ;;  %p523_p3 = scmp.lt.u32.totalorder %s757_s29, %s887_s0 }
  0x25   : > { %p518_p4 = scmp.ne.s32.totalorder %s757_s29, %s517_s7  ;;  %p524_p10 = scmp.lt.u32.totalorder %s522_s9, %s517_s7 }
  0x26   : > { %p526_p13 = scmp.lt.u32.totalorder %s517_s7, %s757_s29 }
  0x27   : > { %p520_p6 = pnand %p519_p5, %p518_p4  ;;  %p525_p11 = por %p524_p10, %p523_p3 }
  0x29   : > { %p521_p7 = pneg %p520_p6  ;;  %p527_p1 = por %p526_p13, %p525_p11 }
  0x2b   : > { %p528_p2 = pnand %p527_p1, %p521_p7 }
  0x2d   : > { %531 = shalt.err (!%p528_p2)
}
  0x2e   : > { %s532_s5 = scalar_lea.vmem %s752_s11, 64  ;;  %s647_s21 = smov [#allocation2]  }
  0x2f   : > { %p533_p4 = scmp.ne.s32.totalorder %s752_s11, %s532_s5  ;;  %s537_s25 = sshll.u32 %s647_s21, 4  ;;  %s538_s25 = int_to_ptr.vmem [resolvable:$false] %s537_s25 }
  0x30   : > { %s539_s26 = scalar_lea.vmem %s538_s25, 128  ;;  %p540_p9 = scmp.lt.s32.totalorder %s752_s11, %s538_s25 }
  0x31   : > { %p535_p6 = pnand %p533_p4, %p519_p5  ;;  %p541_p3 = scmp.lt.s32.totalorder %s539_s26, %s532_s5 }
  0x33   : > { %p536_p12 = pneg %p535_p6  ;;  %p542_p10 = por %p541_p3, %p540_p9 }
  0x35   : > { %p543_p11 = pnand %p542_p10, %p536_p12 }
  0x37   : > { %546 = shalt.err (!%p543_p11)
}
  0x38   : > { %444 = dma.hbm_to_vmem [thread:$0]  (!%p761_p0), %s757_s29, 64, %s752_s11, %s178_s30  }
  0x39   : > { %p889_p1 = scmp.lt.s32.totalorder %s645_s19, 5  ;;  %p890_p2 = scmp.ge.s32.totalorder %s645_s19, 1 }
  0x3b   : > { %p208_p5 = pnand %p890_p2, %p889_p1 }
  0x3c   : > { %s797_s7 = sand.u32 (!%p208_p5), 1, %s621_s13  }
  0x3d   : > { %211 = sbr.rel (%p208_p5) target bundleno = 222 (0xde), region = 32  ;;  %s428_s8 = sshll.u32 (!%p208_p5), %s797_s7, 2 }
  0x3e   : > { %s214_s9 = scalar_lea.sflag (!%p208_p5), [#allocation3], %s797_s7  ;;  %s217_s10 = scalar_lea.vmem (!%p208_p5), [#allocation2], %s428_s8 }
  0x44   : > { %608 = dma.done.wait (%p731_p8), %s214_s9, 64  }
  0x45   : > { %610 = vsyncadd (%p731_p8), %s214_s9, 4294967232  ;;  %v648_v0 = vmov 0   ;;  %s891_s2 = sld [smem:[#allocation10_spill]]  ;;  %p251_p9 = scmp.lt.s32.totalorder %s633_s16, 1  ;;  %v263_v3 = vld [vmem:[%s217_s10] sm:$0xf] }
  0x46   : > { %516 = vset.pattern.permute.xlu0 %v648_v0  ;;  %p253_p12 = scmp.lt.s32.totalorder %s629_s15, 1  ;;  %s433_s5 = sshll.u32 %s633_s16, 1 }
  0x47   : > { %s252_s24 = scalar_select %p251_p9, %s633_s16, 1 }
  0x48   : > { %s254_s30 = scalar_select %p253_p12, %s629_s15, 1 }
  0x49   : > { %s430_s20 = sshll.u32 %s252_s24, 1  ;;  %s293_s9 = sadd.s32 %s629_s15, %s433_s5 }
  0x4a   : > { %s256_s27 = sadd.s32 %s430_s20, %s254_s30  ;;  %s434_s11 = sshll.u32 %s293_s9, 6 }
  0x4b   : > { %v262_v1 = vld [vmem:[%s891_s2] sm:$0xf]  ;;  %s257_s26 = scalar_lea.vmem %s875_s1, %s256_s27  ;;  %s250_s29 = scalar_lea.vmem [#allocation5], %s428_s8 }
  0x4c   : > { %267 = vperm.xlu0 %516, %v262_v1   ;;  %v431_v2 = vld [vmem:[%s257_s26] ss:$0 sm:$0xff]  ;;  %s297_s0 = sshll.u32 %s250_s29, 4  ;;  %s820_s24 = scalar_lea.hbm %s877_s3, %s434_s11  ;;  %s822_s0 = int_to_ptr.vmem [resolvable:$true] %s297_s0 }
  0x4d   : > { %s280_s15 = scalar_lea.sflag [#allocation4], %s797_s7  ;;  %s547_s16 = scalar_lea.vmem %s822_s0, 64 }
  0x4e   : > { %p548_p8 = scmp.ne.s32.totalorder %s822_s0, %s547_s16  ;;  %p892_p0 = scmp.ne.s32.totalorder %s885_s28, 0 }
  0x4f   : > { %s649_s8 = smov [#allocation5]  }
  0x50   : > { %p549_p7 = pnand %p548_p8, %p892_p0  ;;  %s551_s10 = sshll.u32 %s649_s8, 4  ;;  %s552_s10 = int_to_ptr.vmem [resolvable:$false] %s551_s10 }
  0x51   : > { %s553_s30 = scalar_lea.vmem %s552_s10, 128  ;;  %p554_p4 = scmp.lt.s32.totalorder %s822_s0, %s552_s10 }
  0x52   : > { %p550_p13 = pneg %p549_p7  ;;  %p555_p6 = scmp.lt.s32.totalorder %s553_s30, %s547_s16 }
  0x54   : > { %p556_p3 = por %p555_p6, %p554_p4 }
  0x56   : > { %p557_p10 = pnand %p556_p3, %p550_p13 }
  0xcb   : > { %v268_v4 = vpop.permute.xlu0 %267 }
  0xcc   : > { %v276_v5 = vmul.f32 %v431_v2, %v268_v4 }
  0xce   : > { %v277_v6 = vadd.f32 %v276_v5, %v263_v3 }
  0xd0   : > { %278 = vst [vmem:[%s250_s29] sm:$0xf] %v277_v6 }
  0xd1   : > { %560 = shalt.err (!%p557_p10)
}
  0xd2   : > { %s561_s2 = scalar_lea.hbm %s820_s24, 64  ;;  %s565_s20 = scalar_lea.hbm %s877_s3, 256 }
  0xd3   : > { %p562_p11 = scmp.ne.s32.totalorder %s820_s24, %s561_s2  ;;  %p566_p5 = scmp.lt.u32.totalorder %s820_s24, %s877_s3 }
  0xd4   : > { %p567_p9 = scmp.lt.u32.totalorder %s565_s20, %s561_s2  ;;  %p569_p8 = scmp.lt.u32.totalorder %s561_s2, %s820_s24 }
  0xd5   : > { %p563_p1 = pnand %p562_p11, %p892_p0 }
  0xd6   : > { %p568_p12 = por %p567_p9, %p566_p5 }
  0xd7   : > { %p564_p2 = pneg %p563_p1 }
  0xd8   : > { %p570_p7 = por %p569_p8, %p568_p12 }
  0xda   : > { %p571_p13 = pnand %p570_p7, %p564_p2 }
  0xdc   : > { %574 = shalt.err (!%p571_p13)
}
  0xdd   : > { %439 = dma.vmem_to_hbm [thread:$0]  (%p892_p0), %s822_s0, 64, %s820_s24, %s280_s15  }
  0xde PF: > { %p450_p4 = scmp.ge.s32.totalorder %s645_s19, 2  ;;  %s309_s21 = sand.u32 1, %s617_s12  }
  0xdf   : > { %p893_p6 = scmp.ne.s32.totalorder %s886_s4, 0  ;;  %s310_s25 = scalar_lea.sflag [#allocation4], %s309_s21 }
  0xe1   : > { %p446_p3 = pnand %p450_p4, %p893_p6 }
  0xe3   : > { %612 = dma.done.wait (!%p446_p3), %s310_s25, 64  }
  0xe4   : > { %614 = vsyncadd (!%p446_p3), %s310_s25, 4294967232  ;;  %s19_s19 = sadd.s32 1, %s645_s19   ;;  %s894_s0 = sld [smem:[#allocation8_spill]] }
  0xe5   : > { %p16_p10 = scmp.ge.s32.totalorder %s19_s19, 6   ;;  %s895_s12 = smov %s621_s13 }
  0xe6   : > { %s896_s13 = smov %s625_s14  ;;  %s897_s14 = smov %s748_s6 }
  0xe7   : > { %s898_s15 = smov %s637_s17  ;;  %s899_s16 = smov %s641_s18 }
  0xe8   : > { %s900_s17 = smov %s903_s22  ;;  %18 = sbr.rel (!%p16_p10) target bundleno = 10 (0xa), region = 83 }
  0xea   : > { %s901_s18 = smov %s894_s0 }
  0xef   :  { %315 = vsyncpa [#allocation3], 1 }
  0xf0   :  { %317 = vsyncpa [#allocation3 + $0x1], 1 }
  0xf1   :  { %318 = vsyncpa [#allocation4], 1 }
  0xf2   :  { %320 = vsyncpa [#allocation4 + $0x1], 1 }

</bundles_post_ra>
